<compile_context>
chip_gen: v6e
topology: v6e:2x2x1
jax: 0.10.0
libtpu: 0.0.40
codegen_flags: <defaults>
</compile_context>

<pallas_src>
import jax
import jax.numpy as jnp
from jax.experimental import pallas as pl
from jax.experimental.pallas import tpu as pltpu


def _round_up(x, m):
    return ((x + m - 1) // m) * m


def _gate_blend(nmt_mxu, bert_mxu, w1t, w2t, b2, nmt_blend, bert_blend, out_dtype):
    """g = silu(nmt @ W1t) * (bert @ W2t + b2);  out = bert + g * (nmt - bert)."""
    h1 = jnp.dot(nmt_mxu, w1t, preferred_element_type=jnp.float32)
    h2 = jnp.dot(bert_mxu, w2t, preferred_element_type=jnp.float32) + b2
    # silu(h1) * h2 in f32 (sigmoid goes to the EUP slot).
    g = (h1 * jax.nn.sigmoid(h1)) * h2
    nmt_f = nmt_blend.astype(jnp.float32)
    bert_f = bert_blend.astype(jnp.float32)
    return (bert_f + g * (nmt_f - bert_f)).astype(out_dtype)


def _kernel_full(nmt_ref, bert_ref, w1t_ref, w2t_ref, b2_ref, o_ref):
    # tn == D: one weight slab covers all output columns; the blend reuses the
    # already-loaded full activation tiles.
    cdt = w1t_ref.dtype
    nmt = nmt_ref[...]
    bert = bert_ref[...]
    o_ref[...] = _gate_blend(nmt.astype(cdt), bert.astype(cdt),
                             w1t_ref[...], w2t_ref[...], b2_ref[...],
                             nmt, bert, o_ref.dtype)


def _kernel_coltiled(nmt_ref, bert_ref, nmt_c_ref, bert_c_ref,
                     w1t_ref, w2t_ref, b2_ref, o_ref):
    # tn < D: full (tm, D) activation rows feed the MXU contraction while
    # dedicated (tm, tn) column blocks (indexed by the column grid axis) feed
    # the elementwise blend.
    cdt = w1t_ref.dtype
    o_ref[...] = _gate_blend(nmt_ref[...].astype(cdt), bert_ref[...].astype(cdt),
                             w1t_ref[...], w2t_ref[...], b2_ref[...],
                             nmt_c_ref[...], bert_c_ref[...], o_ref.dtype)


def _vmem_capacity_bytes():
    try:
        return int(pltpu.get_tpu_info().vmem_capacity_bytes)
    except Exception:
        return 64 * 1024 * 1024  # conservative (v7x per-TC) fallback


def dynamic_gate_glu(nmt_out, bert_out, w1, w2, b2, *, tm=None, tn=None,
                     param_dtype=None, interpret=False):
    """nmt_out, bert_out: (B, S, D) activations.
    w1, w2: (D, D) in PyTorch nn.Linear (out_features, in_features) layout.
    b2: (D,) bias.
    param_dtype: dtype of the MXU operands (default bf16, f32 accumulation);
    pass jnp.float32 to force full-precision weights."""
    B, S, D = nmt_out.shape
    assert bert_out.shape == (B, S, D)
    M = B * S
    act_dtype = nmt_out.dtype
    act_b = jnp.dtype(act_dtype).itemsize

    if param_dtype is None:
        param_dtype = jnp.bfloat16
    w_b = jnp.dtype(param_dtype).itemsize

    vmem_cap = _vmem_capacity_bytes()
    vmem_ceiling = vmem_cap - max(vmem_cap // 6, 12 * 1024 * 1024)

    # Row tile: generation-aware default, rounded to the activation dtype's
    # sublane packing, capped so small M still yields >= 2 grid steps.
    packing = 8 * (4 // act_b) if act_b in (1, 2, 4) else 8
    if tm is None:
        tm = 512 if vmem_cap >= 96 * 1024 * 1024 else 256
    tm = _round_up(max(int(tm), packing), packing)
    tm = min(tm, max(packing, _round_up(pl.cdiv(M, 2), packing)))

    # Column tile: keep both weights fully VMEM-resident when cheap, otherwise
    # stream (D, tn) slabs so residency stays bounded regardless of D.
    if tn is None:
        if 4 * D * D * w_b <= 16 * 1024 * 1024:
            tn = D
        else:
            tn = next((c for c in (512, 256, 128) if D % c == 0), D)
    tn = int(tn)
    if tn != D and (D % tn != 0 or tn % 128 != 0):
        raise ValueError(f"tn={tn} must equal D or be a multiple of 128 that divides D={D}")
    split_cols = tn < D

    num_m = pl.cdiv(M, tm)
    num_n = D // tn
    grid = (num_m, num_n)

    nmt2d = nmt_out.reshape(M, D)
    bert2d = bert_out.reshape(M, D)

    # One-time HBM-side transpose into (in, out) layout so the kernel runs the
    # canonical x @ Wt contraction (amortized over all grid steps).
    w1t = jnp.asarray(w1).T.astype(param_dtype)
    w2t = jnp.asarray(w2).T.astype(param_dtype)
    b2row = jnp.asarray(b2).reshape(1, D).astype(jnp.float32)

    # VMEM budget: streamed weight slabs + double-buffered activation/output
    # tiles + MXU operand casts + f32 epilogue temporaries.
    budget = (2 * 2 * D * tn * w_b                                   # W1t + W2t slabs (x2 bufs)
              + 2 * tn * 4                                           # bias slab
              + 2 * 2 * tm * D * act_b                               # full nmt/bert row tiles
              + (2 * 2 * tm * tn * act_b if split_cols else 0)       # blend column tiles
              + 2 * tm * tn * act_b                                  # output tile
              + 2 * tm * D * w_b                                     # MXU operand casts
              + 8 * tm * tn * 4)                                     # f32 intermediates
    if budget > vmem_ceiling:
        raise ValueError(
            f"DynamicGateGLU tile config needs ~{budget >> 20} MiB VMEM but only "
            f"~{vmem_ceiling >> 20} MiB is usable on this TPU; reduce tm/tn.")
    vmem_limit = int(min(vmem_ceiling, max(32 * 1024 * 1024, budget * 3 // 2)))

    cost = pl.CostEstimate(
        flops=4 * M * D * D + 8 * M * D,      # two matmuls + elementwise
        transcendentals=M * D,                # sigmoid
        bytes_accessed=3 * M * D * act_b + 2 * D * D * w_b + D * 4,
    )

    row_spec = pl.BlockSpec((tm, D), lambda i, j: (i, 0))
    col_spec = pl.BlockSpec((tm, tn), lambda i, j: (i, j))
    w_spec = pl.BlockSpec((D, tn), lambda i, j: (0, j))
    b_spec = pl.BlockSpec((1, tn), lambda i, j: (0, j))

    if split_cols:
        kernel = _kernel_coltiled
        in_specs = [row_spec, row_spec, col_spec, col_spec, w_spec, w_spec, b_spec]
        args = (nmt2d, bert2d, nmt2d, bert2d, w1t, w2t, b2row)
    else:
        kernel = _kernel_full
        in_specs = [row_spec, row_spec, w_spec, w_spec, b_spec]
        args = (nmt2d, bert2d, w1t, w2t, b2row)

    # TODO(synk): for extreme D where even a (tm, D) f32 intermediate is too
    # large, the contraction itself should also be K-tiled with an accumulator.
    out2d = pl.pallas_call(
        kernel,
        out_shape=jax.ShapeDtypeStruct((M, D), act_dtype),
        grid_spec=pltpu.PrefetchScalarGridSpec(
            num_scalar_prefetch=0,
            grid=grid,
            in_specs=in_specs,
            out_specs=col_spec,
        ),
        compiler_params=pltpu.CompilerParams(
            dimension_semantics=("parallel", "parallel"),
            vmem_limit_bytes=vmem_limit),
        cost_estimate=cost,
        interpret=interpret,
    )(*args)

    return out2d.reshape(B, S, D)


def _reference(nmt_out, bert_out, w1, w2, b2):
    h1 = nmt_out @ w1.T
    h2 = bert_out @ w2.T + b2
    g = jax.nn.silu(h1) * h2
    return g * nmt_out + (1.0 - g) * bert_out


if __name__ == "__main__":
    key = jax.random.PRNGKey(0)
    k = jax.random.split(key, 10)

    # ---- Test 1: D=128, tiny M (tm capping + >=2 grid steps), strict f32. ----
    D = 128
    w1 = jax.random.normal(k[0], (D, D), dtype=jnp.float32) * (1.0 / D ** 0.5)
    w2 = jax.random.normal(k[1], (D, D), dtype=jnp.float32) * (1.0 / D ** 0.5)
    b2 = jax.random.normal(k[2], (D,), dtype=jnp.float32) * 0.1
    B, S = 2, 8
    nmt = jax.random.normal(k[3], (B, S, D), dtype=jnp.float32)
    bert = jax.random.normal(k[4], (B, S, D), dtype=jnp.float32)

    out = dynamic_gate_glu(nmt, bert, w1, w2, b2, param_dtype=jnp.float32)
    jax.block_until_ready(out)
    ref = _reference(nmt, bert, w1, w2, b2)
    assert out.shape == (B, S, D)
    assert jnp.allclose(out, ref, atol=5e-4, rtol=5e-4), \
        float(jnp.max(jnp.abs(out - ref)))

    # ---- Test 2: default path — bf16 MXU operands, f32 activations. ----
    out_d = dynamic_gate_glu(nmt, bert, w1, w2, b2)   # param_dtype -> bf16
    jax.block_until_ready(out_d)
    err_d = float(jnp.max(jnp.abs(out_d - ref)))
    assert jnp.isfinite(err_d) and err_d < 0.5, err_d

    # ---- Test 3: D=256, forced column tiling (tn=128), ragged row boundary. ----
    D2 = 256
    w1b = jax.random.normal(k[5], (D2, D2), dtype=jnp.float32) * (1.0 / D2 ** 0.5)
    w2b = jax.random.normal(k[6], (D2, D2), dtype=jnp.float32) * (1.0 / D2 ** 0.5)
    b2b = jax.random.normal(k[7], (D2,), dtype=jnp.float32) * 0.1
    B2, S2 = 3, 40                                    # M = 120 (partial last block)
    nmt2 = jax.random.normal(k[8], (B2, S2, D2), dtype=jnp.float32)
    bert2 = jax.random.normal(k[9], (B2, S2, D2), dtype=jnp.float32)

    out2 = dynamic_gate_glu(nmt2, bert2, w1b, w2b, b2b, tm=64, tn=128,
                            param_dtype=jnp.float32)
    jax.block_until_ready(out2)
    ref2 = _reference(nmt2, bert2, w1b, w2b, b2b)
    assert jnp.allclose(out2, ref2, atol=1e-3, rtol=1e-3), \
        float(jnp.max(jnp.abs(out2 - ref2)))

    # ---- Test 4: bf16 activations (sublane packing 16) + column tiling. ----
    nmt_bf = nmt2.astype(jnp.bfloat16)
    bert_bf = bert2.astype(jnp.bfloat16)
    out_bf = dynamic_gate_glu(nmt_bf, bert_bf, w1b, w2b, b2b, tm=40, tn=128)
    jax.block_until_ready(out_bf)
    ref_bf = _reference(nmt_bf.astype(jnp.float32), bert_bf.astype(jnp.float32),
                        w1b, w2b, b2b)
    abs_err = jnp.abs(out_bf.astype(jnp.float32) - ref_bf)
    err_max = float(jnp.max(abs_err))
    err_mean = float(jnp.mean(abs_err))
    assert jnp.isfinite(err_max) and err_max < 1.0 and err_mean < 0.05, \
        (err_max, err_mean)

    print("KERNEL_OK")
</pallas_src>

<mosaic_0001>
module attributes {stable_mosaic.version = 11 : i64} {
  func.func @_kernel_full(%arg0: i32, %arg1: i32, %arg2: memref<8x128xf32, #tpu.memory_space<vmem>>, %arg3: memref<8x128xf32, #tpu.memory_space<vmem>>, %arg4: memref<128x128xf32, #tpu.memory_space<vmem>>, %arg5: memref<128x128xf32, #tpu.memory_space<vmem>>, %arg6: memref<1x128xf32, #tpu.memory_space<vmem>>, %arg7: memref<8x128xf32, #tpu.memory_space<vmem>>) attributes {dimension_semantics = [#tpu.dimension_semantics<parallel>, #tpu.dimension_semantics<parallel>], iteration_bounds = array<i64: 2, 1>, scalar_prefetch = 0 : i64, scratch_operands = 0 : i64, tpu.core_type = #tpu.core_type<tc>, window_params = [{transform_indices = @transform_0, window_bounds = array<i64: 8, 128>}, {transform_indices = @transform_1, window_bounds = array<i64: 8, 128>}, {transform_indices = @transform_2, window_bounds = array<i64: 128, 128>}, {transform_indices = @transform_3, window_bounds = array<i64: 128, 128>}, {transform_indices = @transform_4, window_bounds = array<i64: 1, 128>}, {transform_indices = @transform_5, window_bounds = array<i64: 8, 128>}]} {
    %c0 = arith.constant 0 : index
    %c0_0 = arith.constant 0 : index
    %0 = vector.load %arg2[%c0, %c0_0] : memref<8x128xf32, #tpu.memory_space<vmem>>, vector<8x128xf32>
    %c0_1 = arith.constant 0 : index
    %c0_2 = arith.constant 0 : index
    %1 = vector.load %arg3[%c0_1, %c0_2] : memref<8x128xf32, #tpu.memory_space<vmem>>, vector<8x128xf32>
    %c0_3 = arith.constant 0 : index
    %c0_4 = arith.constant 0 : index
    %2 = vector.load %arg4[%c0_3, %c0_4] : memref<128x128xf32, #tpu.memory_space<vmem>>, vector<128x128xf32>
    %c0_5 = arith.constant 0 : index
    %c0_6 = arith.constant 0 : index
    %3 = vector.load %arg5[%c0_5, %c0_6] : memref<128x128xf32, #tpu.memory_space<vmem>>, vector<128x128xf32>
    %c0_7 = arith.constant 0 : index
    %c0_8 = arith.constant 0 : index
    %4 = vector.load %arg6[%c0_7, %c0_8] : memref<1x128xf32, #tpu.memory_space<vmem>>, vector<1x128xf32>
    %cst = arith.constant dense<0.000000e+00> : vector<8x128xf32>
    %5 = tpu.matmul %0, %2, %cst {dimension_numbers = #tpu.dot_dimension_numbers<[1], [0], [0], [1], [0, 0, 1, 1], [], []>} : vector<8x128xf32>, vector<128x128xf32>, vector<8x128xf32> -> vector<8x128xf32>
    %cst_9 = arith.constant dense<0.000000e+00> : vector<8x128xf32>
    %6 = tpu.matmul %1, %3, %cst_9 {dimension_numbers = #tpu.dot_dimension_numbers<[1], [0], [0], [1], [0, 0, 1, 1], [], []>} : vector<8x128xf32>, vector<128x128xf32>, vector<8x128xf32> -> vector<8x128xf32>
    %7 = vector.broadcast %4 : vector<1x128xf32> to vector<8x128xf32>
    %8 = arith.addf %6, %7 : vector<8x128xf32>
    %9 = arith.negf %5 : vector<8x128xf32>
    %10 = math.exp %9 : vector<8x128xf32>
    %cst_10 = arith.constant 1.000000e+00 : f32
    %11 = vector.broadcast %cst_10 : f32 to vector<8x128xf32>
    %12 = arith.addf %11, %10 : vector<8x128xf32>
    %13 = arith.divf %11, %12 : vector<8x128xf32>
    %14 = arith.mulf %5, %13 : vector<8x128xf32>
    %15 = arith.mulf %14, %8 : vector<8x128xf32>
    %16 = arith.subf %0, %1 : vector<8x128xf32>
    %17 = arith.mulf %15, %16 : vector<8x128xf32>
    %18 = arith.addf %1, %17 : vector<8x128xf32>
    %c0_11 = arith.constant 0 : index
    %c0_12 = arith.constant 0 : index
    %19 = vector.load %arg7[%c0_11, %c0_12] : memref<8x128xf32, #tpu.memory_space<vmem>>, vector<8x128xf32>
    tpu.vector_store %arg7[%c0_11, %c0_12], %18 {strides = array<i32>} : memref<8x128xf32, #tpu.memory_space<vmem>>, vector<8x128xf32>,
    return
  }
  func.func @transform_0(%arg0: i32, %arg1: i32) -> (i32, i32) {
    %c0_i32 = arith.constant 0 : i32
    %c0_i32_0 = arith.constant 0 : i32
    return %arg0, %c0_i32 : i32, i32
  }
  func.func @transform_1(%arg0: i32, %arg1: i32) -> (i32, i32) {
    %c0_i32 = arith.constant 0 : i32
    %c0_i32_0 = arith.constant 0 : i32
    return %arg0, %c0_i32 : i32, i32
  }
  func.func @transform_2(%arg0: i32, %arg1: i32) -> (i32, i32) {
    %c0_i32 = arith.constant 0 : i32
    %c0_i32_0 = arith.constant 0 : i32
    return %c0_i32, %arg1 : i32, i32
  }
  func.func @transform_3(%arg0: i32, %arg1: i32) -> (i32, i32) {
    %c0_i32 = arith.constant 0 : i32
    %c0_i32_0 = arith.constant 0 : i32
    return %c0_i32, %arg1 : i32, i32
  }
  func.func @transform_4(%arg0: i32, %arg1: i32) -> (i32, i32) {
    %c0_i32 = arith.constant 0 : i32
    %c0_i32_0 = arith.constant 0 : i32
    return %c0_i32, %arg1 : i32, i32
  }
  func.func @transform_5(%arg0: i32, %arg1: i32) -> (i32, i32) {
    %c0_i32 = arith.constant 0 : i32
    return %arg0, %arg1 : i32, i32
  }
}

</mosaic_0001>

<bundles_post_ra>
// kernel: tpu_custom_call.1
= control target key start
LH: loop header
LB: loop body
LE: loop exit
PB: predicated region body
PF: predicated region fallthrough
CT: control target
= control target key end

     0   :  { %s1397_s0 = inlined_call_operand.hbm [shape: f32[16,128], index: 0, kind: input, shape index: {}]   ;;  %s1398_s1 = inlined_call_operand.hbm [shape: f32[16,128], index: 1, kind: input, shape index: {}]   ;;  %s1399_s2 = inlined_call_operand.hbm [shape: f32[128,128], index: 2, kind: input, shape index: {}]   ;;  %s1400_s3 = inlined_call_operand.hbm [shape: f32[128,128], index: 3, kind: input, shape index: {}]   ;;  %s1401_s4 = inlined_call_operand.vmem [shape: f32[1,128], index: 4, kind: input, shape index: {}]   ;;  %s1402_s5 = inlined_call_operand.hbm [shape: f32[16,128], index: 5, kind: output, shape index: {}]  }
   0x1   :  { %1404 = sst [smem:[#allocation16_spill]] %s1397_s0 }
   0x2   :  { %1405 = sst [smem:[#allocation17_spill]] %s1398_s1 }
   0x3   :  { %1406 = sst [smem:[#allocation18_spill]] %s1399_s2 }
   0x4   :  { %10 = vsyncpa [#allocation3], 0 }
   0x5   :  { %12 = vsyncpa [#allocation3 + $0x1], 0 }
   0x6   :  { %13 = vsyncpa [#allocation6], 0 }
   0x7   :  { %15 = vsyncpa [#allocation6 + $0x1], 0 }
   0x8   :  { %16 = vsyncpa [#allocation9], 0 }
   0x9   :  { %17 = vsyncpa [#allocation4], 0 }
   0xa   :  { %19 = vsyncpa [#allocation4 + $0x1], 0  ;;  %s1157_s18 = smov 0   ;;  %s1159_s19 = smov 0  }
   0xb   :  { %s1161_s20 = smov 0   ;;  %s1163_s21 = smov 0  }
   0xc   :  { %s1165_s22 = smov 0   ;;  %s1167_s23 = smov 0  }
   0xd LB: > { %s1188_s24 = sadd.s32 4294967295, %s1116_s23   ;;  %s694_s25 = sadd.s32 4294967294, %s1116_s23   ;;  %s1116_s23 = sphi %s1167_s23, %s25_s23   ;;  %s1112_s22 = sphi %s1165_s22, %s1427_s22   ;;  %s1108_s21 = sphi %s1163_s21, %s1426_s21   ;;  %s1104_s20 = sphi %s1161_s20, %s1425_s20   ;;  %s1100_s19 = sphi %s1159_s19, %s1424_s19   ;;  %s1096_s18 = sphi %s1157_s18, %s1423_s18  }
   0xe   : > { %p57_p0 = scmp.ne.s32.totalorder %s1100_s19, %s1096_s18  ;;  %p1403_p1 = scmp.eq.s32.totalorder %s1188_s24, 0 }
   0xf   : > { %p193_p3 = scmp.eq.s32.totalorder %s694_s25, 1  ;;  %p695_p5 = scmp.ge.s32.totalorder %s1116_s23, 1 }
  0x10   : > { %p1197_p4 = por %p1403_p1, %p57_p0  ;;  %p200_p7 = scmp.lt.s32.totalorder %s1116_s23, 3 }
  0x11   : > { %p1202_p6 = por %p193_p3, %p57_p0  ;;  %s1118_s29 = smov [#allocation7]  }
  0x12   : > { %p1207_p8 = pnand %p695_p5, %p200_p7  ;;  %s214_s30 = sshll.u32 %s1118_s29, 4  ;;  %s215_s30 = int_to_ptr.vmem [resolvable:$true] %s214_s30 }
  0x13   : > { %s1408_s27 = scalar_select %p1202_p6, 1, 0 }
  0x14   : > { %p834_p9 = pneg %p1207_p8  ;;  %s1119_s7 = smov [#allocation8]  }
  0x15   : > { %s229_s8 = sshll.u32 %s1119_s7, 4  ;;  %s927_s9 = scalar_lea.vmem %s215_s30, 2048  ;;  %s230_s8 = int_to_ptr.vmem [resolvable:$true] %s229_s8 }
  0x16   : > { %p1216_p11 = pnand %p834_p9, %p1403_p1  ;;  %p928_p13 = scmp.ne.s32.totalorder %s215_s30, %s927_s9 }
  0x17   : > { %p935_p5 = scmp.lt.s32.totalorder %s215_s30, %s215_s30  ;;  %p936_p7 = scmp.lt.s32.totalorder %s927_s9, %s927_s9 }
  0x18   : > { %p918_p12 = pneg %p1216_p11 }
  0x19   : > { %p937_p10 = por %p936_p7, %p935_p5 }
  0x1a   : > { %p930_p0 = pnand %p928_p13, %p918_p12 }
  0x1c   : > { %p931_p3 = pneg %p930_p0 }
  0x1e   : > { %p938_p9 = pnand %p937_p10, %p931_p3 }
  0x20   : > { %941 = shalt.err (!%p938_p9)
}
  0x21   : > { %s1120_s10 = smov 128   ;;  %s1121_s11 = smov 8  }
  0x22   : > { %s1411_s2 = sld [smem:[#allocation18_spill]]  ;;  %s953_s14 = scalar_lea.vmem %s230_s8, 2048 }
  0x23   : > { %p954_p1 = scmp.ne.s32.totalorder %s230_s8, %s953_s14  ;;  %p961_p2 = scmp.lt.s32.totalorder %s230_s8, %s230_s8 }
  0x24   : > { %p962_p6 = scmp.lt.s32.totalorder %s953_s14, %s953_s14 }
  0x25   : > { %p956_p13 = pnand %p954_p1, %p918_p12 }
  0x26   : > { %p963_p5 = por %p962_p6, %p961_p2 }
  0x27   : > { %p957_p0 = pneg %p956_p13 }
  0x28   : > { %837 = dma.hbm_to_vmem [thread:$0]  (!%p1216_p11), %s1411_s2, 2048, %s215_s30, [#allocation6], %s1120_s10, %s1120_s10, %s1121_s11  }
  0x29   : > { %p964_p10 = pnand %p963_p5, %p957_p0 }
  0x2b   : > { %967 = shalt.err (!%p964_p10)
}
  0x2c   : > { %840 = dma.hbm_to_vmem [thread:$0]  (!%p1216_p11), %s1400_s3, 2048, %s230_s8, [#allocation9], %s1120_s10, %s1120_s10, %s1121_s11  }
  0x2d   : > { %s37_s17 = sadd.s32 1, %s1112_s22  ;;  %s44_s25 = sadd.s32 1, %s1104_s20 }
  0x2e   : > { %p39_p1 = scmp.ge.s32.totalorder %s37_s17, 2  ;;  %p51_p2 = scmp.ne.s32.totalorder %s1104_s20, %s1100_s19 }
  0x2f   : > { %p52_p6 = scmp.eq.s32.totalorder %s1116_s23, 0  ;;  %p854_p12 = scmp.lt.s32.totalorder %s1116_s23, 2 }
  0x30   : > { %s1429_s17 = smov (%p39_p1, %s37_s17), 0  ;;  %p1412_p7 = scmp.eq.s32.totalorder %s1188_s24, 1 }
  0x31   : > { %p53_p3 = por %p52_p6, %p51_p2  ;;  %s41_s30 = ssub.s32 %s1112_s22, %s1429_s17 }
  0x32   : > { %p1248_p9 = por %p1412_p7, %p51_p2  ;;  %s249_s6 = sand.u32 1, %s1104_s20  }
  0x33   : > { %p42_p13 = scmp.eq.s32.totalorder %s41_s30, 0  ;;  %s700_s7 = sshll.u32 %s249_s6, 3 }
  0x34   : > { %s701_s8 = sshll.u32 %s1112_s22, 7  ;;  %s1414_s0 = sld [smem:[#allocation16_spill]] }
  0x35   : > { %s1257_s9 = scalar_select %p42_p13, %s1104_s20, %s44_s25  }
  0x36   : > { %s253_s13 = scalar_lea.vmem [#allocation2], %s700_s7  ;;  %p1264_p11 = pnand %p854_p12, %p53_p3 }
  0x37   : > { %s260_s14 = sshll.u32 %s253_s13, 4  ;;  %s1416_s1 = sld [smem:[#allocation17_spill]]  ;;  %s261_s14 = int_to_ptr.vmem [resolvable:$true] %s260_s14 }
  0x38   : > { %s250_s25 = scalar_lea.sflag [#allocation3], %s249_s6  ;;  %p970_p0 = pneg %p1264_p11 }
  0x39   : > { %s981_s10 = scalar_lea.vmem %s261_s14, 128  ;;  %s1122_s11 = smov [#allocation2]  }
  0x3a   : > { %s258_s12 = scalar_lea.hbm %s1414_s0, %s701_s8  ;;  %p982_p5 = scmp.ne.s32.totalorder %s261_s14, %s981_s10 }
  0x3b   : > { %s986_s13 = sshll.u32 %s1122_s11, 4  ;;  %s987_s13 = int_to_ptr.vmem [resolvable:$false] %s986_s13 }
  0x3c   : > { %p984_p10 = pnand %p982_p5, %p970_p0  ;;  %s988_s0 = scalar_lea.vmem %s987_s13, 256 }
  0x3d   : > { %s1271_s2 = scalar_lea.hbm %s1416_s1, %s701_s8  ;;  %p989_p2 = scmp.lt.s32.totalorder %s261_s14, %s987_s13 }
  0x3e   : > { %p985_p1 = pneg %p984_p10  ;;  %p990_p6 = scmp.lt.s32.totalorder %s988_s0, %s981_s10 }
  0x40   : > { %p991_p12 = por %p990_p6, %p989_p2 }
  0x42   : > { %p992_p3 = pnand %p991_p12, %p985_p1 }
  0x44   : > { %995 = shalt.err (!%p992_p3)
}
  0x45   : > { %844 = dma.hbm_to_vmem [thread:$0]  (!%p1264_p11), %s258_s12, 128, %s261_s14, %s250_s25  }
  0x46   : > { %s267_s6 = sand.u32 1, %s1116_s23   ;;  %s271_s8 = scalar_lea.vmem [#allocation5], %s700_s7 }
  0x47   : > { %s278_s16 = sshll.u32 %s271_s8, 4  ;;  %s268_s30 = scalar_lea.sflag [#allocation6], %s267_s6  ;;  %s279_s16 = int_to_ptr.vmem [resolvable:$true] %s278_s16 }
  0x48   : > { %s1009_s1 = scalar_lea.vmem %s279_s16, 128  ;;  %s1123_s0 = smov [#allocation5]  }
  0x49   : > { %p1010_p7 = scmp.ne.s32.totalorder %s279_s16, %s1009_s1  ;;  %s1014_s10 = sshll.u32 %s1123_s0, 4  ;;  %s1015_s10 = int_to_ptr.vmem [resolvable:$false] %s1014_s10 }
  0x4a   : > { %s1016_s11 = scalar_lea.vmem %s1015_s10, 256  ;;  %p1017_p10 = scmp.lt.s32.totalorder %s279_s16, %s1015_s10 }
  0x4b   : > { %p1012_p13 = pnand %p1010_p7, %p970_p0  ;;  %p1018_p1 = scmp.lt.s32.totalorder %s1016_s11, %s1009_s1 }
  0x4d   : > { %p1013_p5 = pneg %p1012_p13  ;;  %p1019_p2 = por %p1018_p1, %p1017_p10 }
  0x4f   : > { %p1020_p6 = pnand %p1019_p2, %p1013_p5 }
  0x51   : > { %1023 = shalt.err (!%p1020_p6)
}
  0x52   : > { %847 = dma.hbm_to_vmem [thread:$0]  (!%p1264_p11), %s1271_s2, 128, %s279_s16, %s268_s30  }
  0x53   : > { %287 = sbr.rel (%p1207_p8) target bundleno = 378 (0x17a), region = 40  ;;  %s1290_s7 = sand.u32 (!%p1207_p8), 1, %s1100_s19  }
  0x54   : > { %s1293_s12 = sshll.u32 (!%p1207_p8), %s1290_s7, 3  ;;  %s290_s1 = scalar_lea.sflag (!%p1207_p8), [#allocation3], %s1290_s7 }
  0x55   : > { %s293_s14 = scalar_lea.vmem (!%p1207_p8), [#allocation2], %s1293_s12 }
  0x58   : > { %1075 = dma.done.wait (%p1197_p4), %s290_s1, 128  }
  0x59   : > { %1077 = vsyncadd (%p1197_p4), %s290_s1, 4294967168  ;;  %s298_s2 = sand.u32 1, %s1188_s24   ;;  %s302_s15 = scalar_lea.vmem [#allocation5], %s1293_s12 }
  0x5a   : > { %s299_s28 = scalar_lea.sflag [#allocation6], %s298_s2 }
  0x5b   : > { %1079 = dma.done.wait (%p1197_p4), %s299_s28, 128  }
  0x5c   : > { %1081 = vsyncadd (%p1197_p4), %s299_s28, 4294967168  ;;  %p1417_p8 = scmp.eq.s32.totalorder %s1188_s24, 0 }
  0x5e   : > { %1083 = dma.done.wait (%p1417_p8), [#allocation6], 2048   ;;  %p1418_p11 = pmov %p1417_p8 }
  0x5f   : > { %p1419_p0 = pmov %p1417_p8 }
  0x60   : > { %1085 = vsyncadd (%p1418_p11), [#allocation6], 4294965248 }
  0x61   : > { %1087 = dma.done.wait (%p1419_p0), [#allocation9], 2048   ;;  %p1420_p12 = pmov %p1419_p0 }
  0x62   : > { %v1124_v0 = vmov 0.0   ;;  %vm1125_vm0 = vmmov 0   ;;  %v365_v1 = vld [vmem:[#allocation7 + $0x78] sm:$0xff]  ;;  %v364_v2 = vld [vmem:[#allocation7 + $0x70] sm:$0xff]  ;;  %v363_v3 = vld [vmem:[#allocation7 + $0x68] sm:$0xff]  ;;  %s713_s25 = sshll.u32 %s1108_s21, 7 }
  0x63   : > { %1089 = vsyncadd (%p1420_p12), [#allocation9], 4294965248  ;;  %750 = vmatprep.subr.mxu0 %v1124_v0  ;;  %785 = vmatprep.subr.mxu1 %v1124_v0  ;;  %v362_v4 = vld [vmem:[#allocation7 + $0x60] sm:$0xff]  ;;  %v381_v5 = vld [vmem:[#allocation8 + $0x78] sm:$0xff]  ;;  %s344_s13 = scalar_lea.vmem [#allocation10], %s1293_s12  ;;  %s554_s30 = scalar_lea.hbm %s1402_s5, %s713_s25 }
  0x64   : > { %782 = vmatprep.mubr.msk.f32.mxu0 %vm1125_vm0, %v1124_v0  ;;  %817 = vmatprep.mubr.msk.f32.mxu1 %vm1125_vm0, %v1124_v0  ;;  %v361_v6 = vld [vmem:[#allocation7 + $0x58] sm:$0xff]  ;;  %v380_v7 = vld [vmem:[#allocation8 + $0x70] sm:$0xff]  ;;  %v379_v8 = vld [vmem:[#allocation8 + $0x68] sm:$0xff]  ;;  %s556_s6 = sshll.u32 %s344_s13, 4  ;;  %s542_s0 = scalar_lea.sflag [#allocation4], %s1290_s7  ;;  %s557_s6 = int_to_ptr.vmem [resolvable:$true] %s556_s6 }
  0x65   : > { %751 = vmatpush3.msra.mxu0 %v365_v1  ;;  %786 = vmatpush3.msra.mxu1 %v381_v5  ;;  %v360_v9 = vld [vmem:[#allocation7 + $0x50] sm:$0xff]  ;;  %v378_v10 = vld [vmem:[#allocation8 + $0x60] sm:$0xff]  ;;  %v359_v11 = vld [vmem:[#allocation7 + $0x48] sm:$0xff]  ;;  %s1024_s10 = scalar_lea.vmem %s557_s6, 128  ;;  %s1126_s11 = smov [#allocation10]  }
  0x66   : > { %752 = vmatprep.subr.mxu0 %v1124_v0  ;;  %787 = vmatprep.subr.mxu1 %v1124_v0  ;;  %v377_v12 = vld [vmem:[#allocation8 + $0x58] sm:$0xff]  ;;  %v358_v13 = vld [vmem:[#allocation7 + $0x40] sm:$0xff]  ;;  %v376_v14 = vld [vmem:[#allocation8 + $0x50] sm:$0xff]  ;;  %p1025_p4 = scmp.ne.s32.totalorder %s557_s6, %s1024_s10  ;;  %s1028_s1 = sshll.u32 %s1126_s11, 4  ;;  %s1029_s1 = int_to_ptr.vmem [resolvable:$false] %s1028_s1 }
  0x67   : > { %753 = vmatpush3.msra.mxu0 %v364_v2  ;;  %788 = vmatpush3.msra.mxu1 %v380_v7  ;;  %v357_v15 = vld [vmem:[#allocation7 + $0x38] sm:$0xff]  ;;  %v375_v16 = vld [vmem:[#allocation8 + $0x48] sm:$0xff]  ;;  %v356_v17 = vld [vmem:[#allocation7 + $0x30] sm:$0xff]  ;;  %s1030_s21 = scalar_lea.vmem %s1029_s1, 256  ;;  %p1031_p13 = scmp.lt.s32.totalorder %s557_s6, %s1029_s1 }
  0x68   : > { %754 = vmatprep.subr.mxu0 %v1124_v0  ;;  %789 = vmatprep.subr.mxu1 %v1124_v0  ;;  %v374_v18 = vld [vmem:[#allocation8 + $0x40] sm:$0xff]  ;;  %v355_v19 = vld [vmem:[#allocation7 + $0x28] sm:$0xff]  ;;  %v373_v20 = vld [vmem:[#allocation8 + $0x38] sm:$0xff]  ;;  %p1026_p3 = pnand %p1025_p4, %p1248_p9  ;;  %p1032_p5 = scmp.lt.s32.totalorder %s1030_s21, %s1024_s10 }
  0x69   : > { %755 = vmatpush3.msra.mxu0 %v363_v3  ;;  %790 = vmatpush3.msra.mxu1 %v379_v8  ;;  %v354_v21 = vld [vmem:[#allocation7 + $0x20] sm:$0xff]  ;;  %v372_v22 = vld [vmem:[#allocation8 + $0x30] sm:$0xff]  ;;  %v353_v23 = vld [vmem:[#allocation7 + $0x18] sm:$0xff] }
  0x6a   : > { %756 = vmatprep.subr.mxu0 %v1124_v0  ;;  %791 = vmatprep.subr.mxu1 %v1124_v0  ;;  %v371_v24 = vld [vmem:[#allocation8 + $0x28] sm:$0xff]  ;;  %v352_v25 = vld [vmem:[#allocation7 + $0x10] sm:$0xff]  ;;  %v370_v26 = vld [vmem:[#allocation8 + $0x20] sm:$0xff]  ;;  %p1027_p7 = pneg %p1026_p3  ;;  %p1033_p10 = por %p1032_p5, %p1031_p13 }
  0x6b   : > { %757 = vmatpush3.msra.mxu0 %v362_v4  ;;  %792 = vmatpush3.msra.mxu1 %v378_v10  ;;  %v351_v27 = vld [vmem:[#allocation7 + $0x8] sm:$0xff]  ;;  %v369_v28 = vld [vmem:[#allocation8 + $0x18] sm:$0xff]  ;;  %v350_v29 = vld [vmem:[#allocation7] sm:$0xff] }
  0x6c   : > { %758 = vmatprep.subr.mxu0 %v1124_v0  ;;  %793 = vmatprep.subr.mxu1 %v1124_v0  ;;  %v348_v30 = vld [vmem:[%s293_s14] sm:$0xff]  ;;  %v368_v31 = vld [vmem:[#allocation8 + $0x10] sm:$0xff]  ;;  %p1034_p1 = pnand %p1033_p10, %p1027_p7 }
  0x6d   : > { %759 = vmatpush3.msra.mxu0 %v361_v6  ;;  %794 = vmatpush3.msra.mxu1 %v377_v12  ;;  %v367_v32 = vld [vmem:[#allocation8 + $0x8] sm:$0xff]  ;;  %v366_v33 = vld [vmem:[#allocation8] sm:$0xff]  ;;  %v349_v34 = vld [vmem:[%s302_s15] sm:$0xff] }
  0x6e   : > { %760 = vmatprep.subr.mxu0 %v1124_v0  ;;  %795 = vmatprep.subr.mxu1 %v1124_v0  ;;  %v710_v42 = vld [vmem:[%s1401_s4] ss:$0 sm:$0xff]  ;;  %v537_v45 = vsub.f32 %v348_v30, %v349_v34 }
  0x6f   : > { %761 = vmatpush3.msra.mxu0 %v360_v9  ;;  %796 = vmatpush3.msra.mxu1 %v376_v14 }
  0x70   : > { %762 = vmatprep.subr.mxu0 %v1124_v0  ;;  %797 = vmatprep.subr.mxu1 %v1124_v0 }
  0x71   : > { %763 = vmatpush3.msra.mxu0 %v359_v11  ;;  %798 = vmatpush3.msra.mxu1 %v375_v16 }
  0x72   : > { %764 = vmatprep.subr.mxu0 %v1124_v0  ;;  %799 = vmatprep.subr.mxu1 %v1124_v0 }
  0x73   : > { %765 = vmatpush3.msra.mxu0 %v358_v13  ;;  %800 = vmatpush3.msra.mxu1 %v374_v18 }
  0x74   : > { %766 = vmatprep.subr.mxu0 %v1124_v0  ;;  %801 = vmatprep.subr.mxu1 %v1124_v0 }
  0x75   : > { %767 = vmatpush3.msra.mxu0 %v357_v15  ;;  %802 = vmatpush3.msra.mxu1 %v373_v20 }
  0x76   : > { %768 = vmatprep.subr.mxu0 %v1124_v0  ;;  %803 = vmatprep.subr.mxu1 %v1124_v0 }
  0x77   : > { %769 = vmatpush3.msra.mxu0 %v356_v17  ;;  %804 = vmatpush3.msra.mxu1 %v372_v22 }
  0x78   : > { %770 = vmatprep.subr.mxu0 %v1124_v0  ;;  %805 = vmatprep.subr.mxu1 %v1124_v0 }
  0x79   : > { %771 = vmatpush3.msra.mxu0 %v355_v19  ;;  %806 = vmatpush3.msra.mxu1 %v371_v24 }
  0x7a   : > { %772 = vmatprep.subr.mxu0 %v1124_v0  ;;  %807 = vmatprep.subr.mxu1 %v1124_v0 }
  0x7b   : > { %773 = vmatpush3.msra.mxu0 %v354_v21  ;;  %808 = vmatpush3.msra.mxu1 %v370_v26 }
  0x7c   : > { %774 = vmatprep.subr.mxu0 %v1124_v0  ;;  %809 = vmatprep.subr.mxu1 %v1124_v0 }
  0x7d   : > { %775 = vmatpush3.msra.mxu0 %v353_v23  ;;  %810 = vmatpush3.msra.mxu1 %v369_v28 }
  0x7e   : > { %776 = vmatprep.subr.mxu0 %v1124_v0  ;;  %811 = vmatprep.subr.mxu1 %v1124_v0 }
  0x7f   : > { %777 = vmatpush3.msra.mxu0 %v352_v25  ;;  %812 = vmatpush3.msra.mxu1 %v368_v31 }
  0x80   : > { %778 = vmatprep.subr.mxu0 %v1124_v0  ;;  %813 = vmatprep.subr.mxu1 %v1124_v0 }
  0x81   : > { %779 = vmatpush3.msra.mxu0 %v351_v27  ;;  %814 = vmatpush3.msra.mxu1 %v367_v32 }
  0x82   : > { %780 = vmatprep.subr.mxu0 %v1124_v0  ;;  %815 = vmatprep.subr.mxu1 %v1124_v0 }
  0x83   : > { %781 = vmatpush3.msra.mxu0 %v350_v29  ;;  %816 = vmatpush3.msra.mxu1 %v366_v33 }
  0x84   : > { %783 = vmatmul.mubr.f32.vlgmr.msra.gmra.mxu0 %v348_v30  ;;  %818 = vmatmul.mubr.f32.vlgmr.msra.gmra.mxu1 %v349_v34 }
 0x144   : > { %v449_v35 = vpop.f32.mrf.mxu0  ;;  %v525_v38 = vpop.f32.mrf.mxu1 }
 0x145   : > { %v711_v36 = vmul.f32 -1.442695, %v449_v35  ;;  %v526_v43 = vadd.f32 %v710_v42, %v525_v38 }
 0x146   : > { %v784_v37 = vpop.f32.mrf.mxu0  ;;  %v819_v39 = vpop.f32.mrf.mxu1 }
 0x147   : > { %912 = vpow2.f32 %v711_v36 }
 0x154   : > { %v913_v40 = vpop.eup %912 }
 0x155   : > { %v532_v41 = vadd.f32 1.0, %v913_v40 }
 0x157   : > { %914 = vrcp.f32 %v532_v41 }
 0x164   : > { %v915_v44 = vpop.eup %914 }
 0x165   : > { %v535_v46 = vmul.f32 %v915_v44, %v449_v35 }
 0x167   : > { %v536_v47 = vmul.f32 %v535_v46, %v526_v43 }
 0x169   : > { %v538_v48 = vmul.f32 %v537_v45, %v536_v47 }
 0x16b   : > { %v539_v49 = vadd.f32 %v538_v48, %v349_v34 }
 0x16d   : > { %540 = vst [vmem:[%s344_s13] sm:$0xff] %v539_v49 }
 0x16e   : > { %1037 = shalt.err (!%p1034_p1)
}
 0x16f   : > { %s1038_s12 = scalar_lea.hbm %s554_s30, 128  ;;  %s1042_s2 = scalar_lea.hbm %s1402_s5, 256 }
 0x170   : > { %p1039_p2 = scmp.ne.s32.totalorder %s554_s30, %s1038_s12  ;;  %p1043_p11 = scmp.lt.s32.totalorder %s554_s30, %s1402_s5 }
 0x171   : > { %p1044_p0 = scmp.lt.s32.totalorder %s1042_s2, %s1038_s12 }
 0x172   : > { %p1040_p6 = pnand %p1039_p2, %p1248_p9 }
 0x173   : > { %p1045_p12 = por %p1044_p0, %p1043_p11 }
 0x174   : > { %p1041_p8 = pneg %p1040_p6 }
 0x176   : > { %p1046_p4 = pnand %p1045_p12, %p1041_p8 }
 0x178   : > { %1049 = shalt.err (!%p1046_p4)
}
 0x179   : > { %832 = dma.vmem_to_hbm [thread:$0]  (%p1248_p9), %s557_s6, 128, %s554_s30, %s542_s0  }
 0x17a PF: > { %s568_s24 = sand.u32 1, %s1096_s18   ;;  %p1421_p3 = scmp.ne.s32.totalorder %s1408_s27, 0 }
 0x17b   : > { %p1422_p7 = scmp.ge.s32.totalorder %s1116_s23, 2  ;;  %s569_s26 = scalar_lea.sflag [#allocation4], %s568_s24 }
 0x17d   : > { %p849_p13 = pnand %p1422_p7, %p1421_p3 }
 0x17f   : > { %p850_p5 = pneg %p849_p13 }
 0x181   : > { %1091 = dma.done.wait (%p850_p5), %s569_s26, 128  }
 0x182   : > { %1093 = vsyncadd (%p850_p5), %s569_s26, 4294967168  ;;  %s25_s23 = sadd.s32 1, %s1116_s23   ;;  %s1423_s18 = smov %s1100_s19 }
 0x183   : > { %p22_p10 = scmp.ge.s32.totalorder %s25_s23, 4   ;;  %s1424_s19 = smov %s1104_s20 }
 0x184   : > { %s1425_s20 = smov %s1257_s9  ;;  %s1426_s21 = smov %s1112_s22 }
 0x185   : > { %s1427_s22 = smov %s1429_s17  ;;  %24 = sbr.rel (!%p22_p10) target bundleno = 13 (0xd), region = 111 }
 0x18a   :  { %574 = vsyncpa [#allocation3], 1 }
 0x18b   :  { %576 = vsyncpa [#allocation3 + $0x1], 1 }
 0x18c   :  { %577 = vsyncpa [#allocation6], 1 }
 0x18d   :  { %579 = vsyncpa [#allocation6 + $0x1], 1 }
 0x18e   :  { %580 = vsyncpa [#allocation9], 1 }
 0x18f   :  { %581 = vsyncpa [#allocation4], 1 }
 0x190   :  { %583 = vsyncpa [#allocation4 + $0x1], 1 }

</bundles_post_ra>
